<compile_context>
chip_gen: v7x
topology: tpu7x:2x2x1
jax: 0.10.0
libtpu: 0.0.40
codegen_flags: <defaults>
</compile_context>

<pallas_src>
import functools

import jax
import jax.numpy as jnp
import numpy as np
from jax.experimental import pallas as pl
from jax.experimental.pallas import tpu as pltpu


# ---------------------------------------------------------------------------
# Fused Pallas kernel (one batch-block per grid step, everything stays in VMEM)
# ---------------------------------------------------------------------------
def _inception_kernel(*refs, has_bneck, ks, seq_len):
    """Whole InceptionBlock forward for one block of batch elements.

    x_ref:     (Cin, bblk*L)   f32, batch elements concatenated along lanes
    wb_ref:    (BC, Cin)       bf16 bottleneck weight (only if not folded)
    wN_ref:    (CoutN, KN*CN)  bf16 conv weights flattened for im2col matmul
    wr_ref:    (Cout, Cin)     bf16 residual 1x1 weight with BN scale folded in
    shift_ref: (Cout, 1)       f32 folded BatchNorm shift
    o_ref:     (Cout, bblk*L)  output block
    col_ref:   (max_kc, bblk*L) bf16 im2col scratch
    """
    if has_bneck:
        (x_ref, wb_ref, w1_ref, w2_ref, w3_ref,
         wr_ref, shift_ref, o_ref, col_ref) = refs
    else:
        (x_ref, w1_ref, w2_ref, w3_ref,
         wr_ref, shift_ref, o_ref, col_ref) = refs
        wb_ref = None

    L = seq_len
    Ltot = o_ref.shape[1]                               # bblk * L, lane-dense
    # Lane position within each length-L batch element; computed once and
    # reused by every tap mask of every layer (cheap VPU compares per tap).
    pos = jax.lax.broadcasted_iota(jnp.int32, (1, Ltot), 1) % L

    def conv_same(a, w_ref, k):
        """'Same'-padded conv1d over the batch-concatenated lane axis as ONE
        bf16 MXU matmul.  Tap rows come from an XLU roll + boundary mask, so
        zero padding never leaks across batch-element boundaries."""
        c = a.shape[0]
        p_l = (k - 1) // 2      # torch conv1d_same_padding (stride=1, dil=1)
        for t in range(k):      # small & static: unrolled
            d = t - p_l         # tap offset: col[:, j] = a[:, j + d] (0 if OOB)
            tap = a if d == 0 else pltpu.roll(a, (-d) % Ltot, axis=1)
            if d < 0:
                tap = jnp.where(pos >= -d, tap, 0.0)
            elif d > 0:
                tap = jnp.where(pos < L - d, tap, 0.0)
            col_ref[pl.ds(t * c, c), :] = tap.astype(jnp.bfloat16)
        return jnp.dot(w_ref[...], col_ref[pl.ds(0, k * c), :],
                       preferred_element_type=jnp.float32)

    x = x_ref[...]                                       # (Cin, Ltot) f32

    # Main path: (optional un-folded bottleneck) -> three "same"-padded convs.
    h = x
    if has_bneck:
        h = jnp.dot(wb_ref[...], x.astype(jnp.bfloat16),
                    preferred_element_type=jnp.float32)
    h = conv_same(h, w1_ref, ks[0])                      # f32 accumulators
    h = conv_same(h, w2_ref, ks[1])
    h = conv_same(h, w3_ref, ks[2])

    # Residual path: 1x1 conv (BN scale pre-folded) -> +shift -> ReLU.
    r = jnp.dot(wr_ref[...], x.astype(jnp.bfloat16),
                preferred_element_type=jnp.float32)
    r = jnp.maximum(r + shift_ref[...], 0.0)

    o_ref[...] = (h + r).astype(o_ref.dtype)


# ---------------------------------------------------------------------------
# Wrapper: fold params, pick batch block, build specs, single pallas_call
# ---------------------------------------------------------------------------
def inception_block_forward(x, params, eps=1e-5, batch_block=None):
    """Pallas InceptionBlock.forward (stride=1, eval-mode BatchNorm, residual)."""
    N, Cin, L = map(int, x.shape)
    out_dtype = x.dtype

    # --- One-time host-side folds / flattening of the tiny constant weights ---
    w_convs = [jnp.asarray(w, jnp.float32) for w in params["w_convs"]]
    wb = params.get("w_bottleneck", None)
    has_bneck = wb is not None
    wb2 = None
    if has_bneck:
        wb2 = jnp.asarray(wb, jnp.float32)[:, :, 0]             # (BC, Cin)
        if Cin <= int(wb2.shape[0]):
            # Exact fold of the 1x1 bottleneck into conv1 (shrinks the first
            # im2col contraction from K1*BC down to K1*Cin).
            w_convs[0] = jnp.einsum("obk,bc->ock", w_convs[0], wb2)
            has_bneck = False

    ks, w_flats = [], []
    for w in w_convs:                                           # (Co, Ci, K)
        co, ci, k = map(int, w.shape)
        ks.append(k)
        w_flats.append(jnp.transpose(w, (0, 2, 1))              # (Co, K, Ci)
                       .reshape(co, k * ci).astype(jnp.bfloat16))
    Cout = int(w_convs[-1].shape[0])
    max_kc = max(int(f.shape[1]) for f in w_flats)

    scale = (params["bn_gamma"] /
             jnp.sqrt(params["bn_var"] + eps)).astype(jnp.float32)
    shift = (params["bn_beta"] - params["bn_mean"] * scale)
    shift = shift.reshape(Cout, 1).astype(jnp.float32)
    wr = (params["w_res"][:, :, 0] * scale[:, None]).astype(jnp.bfloat16)

    # --- Batch block: as fat as comfortably fits scoped VMEM, but keep >= 2
    #     grid steps when N >= 2 (v7x has 2 TensorCores to feed). ---
    if batch_block is None:
        per_elem = L * (2 * Cin * 4          # double-buffered f32 input block
                        + 2 * Cout * 4       # double-buffered f32 output block
                        + max_kc * 2         # bf16 im2col scratch
                        + 6 * Cout * 4)      # live f32 intermediates / slack
        batch_block = max(1, min(N, (12 * 2 ** 20) // max(per_elem, 1), 128))
        if N >= 2:
            batch_block = min(batch_block, pl.cdiv(N, 2))
    bblk = int(batch_block)
    if (bblk * L) % 128 != 0:
        bblk = N          # fall back to one full-extent block along lanes

    n_blocks = pl.cdiv(N, bblk)
    n_pad = n_blocks * bblk
    ltot = bblk * L

    # Lane-dense activation layout: (C, N*L); batch elements concatenated along
    # lanes (pure layout plumbing, done once per call by XLA).
    x2 = jnp.transpose(x, (1, 0, 2))                            # (Cin, N, L)
    if n_pad != N:
        x2 = jnp.pad(x2, ((0, 0), (0, n_pad - N), (0, 0)))
    x2 = x2.reshape(Cin, n_pad * L)

    inputs = [x2]
    in_specs = [pl.BlockSpec((Cin, ltot), lambda n: (0, n))]
    if has_bneck:
        wb_bf = wb2.astype(jnp.bfloat16)
        inputs.append(wb_bf)
        in_specs.append(pl.BlockSpec(wb_bf.shape, lambda n: (0, 0)))
    for f in w_flats:
        inputs.append(f)
        in_specs.append(pl.BlockSpec(f.shape, lambda n: (0, 0)))
    inputs += [wr, shift]
    in_specs += [pl.BlockSpec(wr.shape, lambda n: (0, 0)),
                 pl.BlockSpec(shift.shape, lambda n: (0, 0))]

    kernel = functools.partial(_inception_kernel, has_bneck=has_bneck,
                               ks=tuple(ks), seq_len=L)

    out2 = pl.pallas_call(
        kernel,
        out_shape=jax.ShapeDtypeStruct((Cout, n_pad * L), out_dtype),
        grid=(n_blocks,),
        in_specs=in_specs,
        out_specs=pl.BlockSpec((Cout, ltot), lambda n: (0, n)),
        scratch_shapes=[pltpu.VMEM((max_kc, ltot), jnp.bfloat16)],  # im2col tile
        compiler_params=pltpu.CompilerParams(
            dimension_semantics=("parallel",),       # batch blocks -> 2 TCs on v7x
            vmem_limit_bytes=32 * 1024 * 1024),      # v5e default scoped is 16 MiB
    )(*inputs)

    # Back to the module's (N, Cout, L) layout; drop batch padding.
    return out2.reshape(Cout, n_pad, L)[:, :N, :].transpose(1, 0, 2)


# ---------------------------------------------------------------------------
# Pure-JAX f32 reference (mirrors torch conv1d_same_padding) for correctness
# ---------------------------------------------------------------------------
def _ref_conv1d_same(x, w):
    k = w.shape[2]
    padding = k - 1                      # (L-1)*1 - L + 1*(k-1) + 1
    if padding % 2 != 0:                 # even kernel: F.pad(input, [0, 1])
        x = jnp.pad(x, ((0, 0), (0, 0), (0, 1)))
    return jax.lax.conv_general_dilated(
        x, w, window_strides=(1,), padding=[(padding // 2, padding // 2)],
        dimension_numbers=("NCH", "OIH", "NCH"))


def _ref_forward(x, params, eps=1e-5):
    org_x = x
    y = _ref_conv1d_same(x, params["w_bottleneck"])
    for w in params["w_convs"]:
        y = _ref_conv1d_same(y, w)
    scale = params["bn_gamma"] / jnp.sqrt(params["bn_var"] + eps)
    shift = params["bn_beta"] - params["bn_mean"] * scale
    r = _ref_conv1d_same(org_x, params["w_res"])
    r = r * scale[None, :, None] + shift[None, :, None]
    return y + jnp.maximum(r, 0.0)


# ---------------------------------------------------------------------------
if __name__ == "__main__":
    # Small shapes: batch=5 (exercises batch blocking + ragged last block),
    # in_channels=4, out_channels=8, bottleneck_channels=8, kernel_size=9 (>3),
    # seq_len=128, residual=True.
    N, Cin, L = 5, 4, 128
    Cout, BC, Ksz = 8, 8, 9
    ksizes = [Ksz // (2 ** i) for i in range(3)]       # [9, 4, 2]

    key = jax.random.PRNGKey(0)
    keys = jax.random.split(key, 8)

    def w_init(k, shape, fan_in):
        return (jax.random.normal(k, shape, jnp.float32)
                / jnp.sqrt(jnp.float32(fan_in)))

    params = {
        "w_bottleneck": w_init(keys[0], (BC, Cin, 1), Cin),
        "w_convs": [
            w_init(keys[1], (Cout, BC, ksizes[0]), BC * ksizes[0]),
            w_init(keys[2], (Cout, Cout, ksizes[1]), Cout * ksizes[1]),
            w_init(keys[3], (Cout, Cout, ksizes[2]), Cout * ksizes[2]),
        ],
        "w_res": w_init(keys[4], (Cout, Cin, 1), Cin),
        "bn_gamma": 1.0 + 0.1 * jax.random.normal(keys[5], (Cout,), jnp.float32),
        "bn_beta": 0.1 * jax.random.normal(keys[6], (Cout,), jnp.float32),
        "bn_mean": jnp.zeros((Cout,), jnp.float32),
        "bn_var": jnp.ones((Cout,), jnp.float32),
    }

    x = jax.random.normal(keys[7], (N, Cin, L), jnp.float32)

    out = jax.block_until_ready(inception_block_forward(x, params))
    ref = jax.block_until_ready(_ref_forward(x, params))

    assert out.shape == (N, Cout, L), out.shape
    # Tolerance accounts for bf16 MXU operands (per perf review); structural
    # errors (halo / tap-offset bugs) would be O(0.1..1) and still be caught.
    np.testing.assert_allclose(np.asarray(out), np.asarray(ref),
                               rtol=5e-2, atol=5e-2)
    print("KERNEL_OK")
</pallas_src>

<mosaic_0001>
module attributes {stable_mosaic.version = 11 : i64} {
  func.func @_inception_kernel(%arg0: i32, %arg1: memref<4x384xf32, #tpu.memory_space<vmem>>, %arg2: memref<8x36xbf16, #tpu.memory_space<vmem>>, %arg3: memref<8x32xbf16, #tpu.memory_space<vmem>>, %arg4: memref<8x16xbf16, #tpu.memory_space<vmem>>, %arg5: memref<8x4xbf16, #tpu.memory_space<vmem>>, %arg6: memref<8x1xf32, #tpu.memory_space<vmem>>, %arg7: memref<8x384xf32, #tpu.memory_space<vmem>>, %arg8: memref<36x384xbf16, #tpu.memory_space<vmem>>) attributes {dimension_semantics = [#tpu.dimension_semantics<parallel>], iteration_bounds = array<i64: 2>, scalar_prefetch = 0 : i64, scratch_operands = 1 : i64, tpu.core_type = #tpu.core_type<tc>, window_params = [{transform_indices = @transform_0, window_bounds = array<i64: 4, 384>}, {pipeline_mode = #tpu.pipeline_mode<synchronous>, transform_indices = @transform_1, window_bounds = array<i64: 8, 36>}, {pipeline_mode = #tpu.pipeline_mode<synchronous>, transform_indices = @transform_2, window_bounds = array<i64: 8, 32>}, {pipeline_mode = #tpu.pipeline_mode<synchronous>, transform_indices = @transform_3, window_bounds = array<i64: 8, 16>}, {pipeline_mode = #tpu.pipeline_mode<synchronous>, transform_indices = @transform_4, window_bounds = array<i64: 8, 4>}, {pipeline_mode = #tpu.pipeline_mode<synchronous>, transform_indices = @transform_5, window_bounds = array<i64: 8, 1>}, {transform_indices = @transform_6, window_bounds = array<i64: 8, 384>}]} {
    %0 = tpu.iota {dimensions = array<i32: 1>} : vector<1x384xi32>
    %c128_i32 = arith.constant 128 : i32
    %c0_i32 = arith.constant 0 : i32
    %1 = arith.cmpi eq, %c128_i32, %c0_i32 : i32
    %c1_i32 = arith.constant 1 : i32
    %2 = arith.select %1, %c1_i32, %c128_i32 : i32
    %3 = vector.broadcast %2 : i32 to vector<1x384xi32>
    %4 = arith.remsi %0, %3 : vector<1x384xi32>
    %c0_i32_0 = arith.constant 0 : i32
    %5 = vector.broadcast %c0_i32_0 : i32 to vector<1x384xi32>
    %6 = arith.cmpi ne, %4, %5 : vector<1x384xi32>
    %c0_i32_1 = arith.constant 0 : i32
    %7 = vector.broadcast %c0_i32_1 : i32 to vector<1x384xi32>
    %8 = arith.cmpi slt, %4, %7 : vector<1x384xi32>
    %c0_i32_2 = arith.constant 0 : i32
    %9 = arith.cmpi slt, %2, %c0_i32_2 : i32
    %10 = vector.broadcast %9 : i1 to vector<1x384xi1>
    %11 = vector.broadcast %10 : vector<1x384xi1> to vector<1x384xi1>
    %12 = arith.xori %8, %11 : vector<1x384xi1>
    %13 = arith.andi %12, %6 : vector<1x384xi1>
    %14 = vector.broadcast %2 : i32 to vector<1x384xi32>
    %15 = arith.addi %4, %14 : vector<1x384xi32>
    %16 = arith.select %13, %15, %4 : vector<1x384xi1>, vector<1x384xi32>
    %c0 = arith.constant 0 : index
    %c0_3 = arith.constant 0 : index
    %17 = vector.load %arg1[%c0, %c0_3] : memref<4x384xf32, #tpu.memory_space<vmem>>, vector<4x384xf32>
    %c4_i32 = arith.constant 4 : i32
    %18 = tpu.dynamic_rotate %17 by %c4_i32 dim 1 : vector<4x384xf32>, i32 -> vector<4x384xf32>
    %c4_i32_4 = arith.constant 4 : i32
    %19 = vector.broadcast %c4_i32_4 : i32 to vector<1x384xi32>
    %20 = arith.cmpi sge, %16, %19 : vector<1x384xi32>
    %cst = arith.constant 0.000000e+00 : f32
    %21 = vector.shape_cast %20 : vector<1x384xi1> to vector<1x384xi1>
    %22 = vector.broadcast %21 : vector<1x384xi1> to vector<4x384xi1>
    %23 = vector.broadcast %cst : f32 to vector<4x384xf32>
    %24 = arith.select %22, %18, %23 : vector<4x384xi1>, vector<4x384xf32>
    %25 = arith.truncf %24 : vector<4x384xf32> to vector<4x384xbf16>
    %c0_5 = arith.constant 0 : index
    %c0_6 = arith.constant 0 : index
    %26 = vector.load %arg8[%c0_5, %c0_6] : memref<36x384xbf16, #tpu.memory_space<vmem>>, vector<4x384xbf16>
    tpu.vector_store %arg8[%c0_5, %c0_6], %25 {strides = array<i32>} : memref<36x384xbf16, #tpu.memory_space<vmem>>, vector<4x384xbf16>,
    %c3_i32 = arith.constant 3 : i32
    %27 = tpu.dynamic_rotate %17 by %c3_i32 dim 1 : vector<4x384xf32>, i32 -> vector<4x384xf32>
    %c3_i32_7 = arith.constant 3 : i32
    %28 = vector.broadcast %c3_i32_7 : i32 to vector<1x384xi32>
    %29 = arith.cmpi sge, %16, %28 : vector<1x384xi32>
    %cst_8 = arith.constant 0.000000e+00 : f32
    %30 = vector.shape_cast %29 : vector<1x384xi1> to vector<1x384xi1>
    %31 = vector.broadcast %30 : vector<1x384xi1> to vector<4x384xi1>
    %32 = vector.broadcast %cst_8 : f32 to vector<4x384xf32>
    %33 = arith.select %31, %27, %32 : vector<4x384xi1>, vector<4x384xf32>
    %34 = arith.truncf %33 : vector<4x384xf32> to vector<4x384xbf16>
    %c4 = arith.constant 4 : index
    %c0_9 = arith.constant 0 : index
    %35 = vector.load %arg8[%c4, %c0_9] : memref<36x384xbf16, #tpu.memory_space<vmem>>, vector<4x384xbf16>
    tpu.vector_store %arg8[%c4, %c0_9], %34 {strides = array<i32>} : memref<36x384xbf16, #tpu.memory_space<vmem>>, vector<4x384xbf16>,
    %c2_i32 = arith.constant 2 : i32
    %36 = tpu.dynamic_rotate %17 by %c2_i32 dim 1 : vector<4x384xf32>, i32 -> vector<4x384xf32>
    %c2_i32_10 = arith.constant 2 : i32
    %37 = vector.broadcast %c2_i32_10 : i32 to vector<1x384xi32>
    %38 = arith.cmpi sge, %16, %37 : vector<1x384xi32>
    %cst_11 = arith.constant 0.000000e+00 : f32
    %39 = vector.shape_cast %38 : vector<1x384xi1> to vector<1x384xi1>
    %40 = vector.broadcast %39 : vector<1x384xi1> to vector<4x384xi1>
    %41 = vector.broadcast %cst_11 : f32 to vector<4x384xf32>
    %42 = arith.select %40, %36, %41 : vector<4x384xi1>, vector<4x384xf32>
    %43 = arith.truncf %42 : vector<4x384xf32> to vector<4x384xbf16>
    %c8 = arith.constant 8 : index
    %c0_12 = arith.constant 0 : index
    %44 = vector.load %arg8[%c8, %c0_12] : memref<36x384xbf16, #tpu.memory_space<vmem>>, vector<4x384xbf16>
    tpu.vector_store %arg8[%c8, %c0_12], %43 {strides = array<i32>} : memref<36x384xbf16, #tpu.memory_space<vmem>>, vector<4x384xbf16>,
    %c1_i32_13 = arith.constant 1 : i32
    %45 = tpu.dynamic_rotate %17 by %c1_i32_13 dim 1 : vector<4x384xf32>, i32 -> vector<4x384xf32>
    %c1_i32_14 = arith.constant 1 : i32
    %46 = vector.broadcast %c1_i32_14 : i32 to vector<1x384xi32>
    %47 = arith.cmpi sge, %16, %46 : vector<1x384xi32>
    %cst_15 = arith.constant 0.000000e+00 : f32
    %48 = vector.shape_cast %47 : vector<1x384xi1> to vector<1x384xi1>
    %49 = vector.broadcast %48 : vector<1x384xi1> to vector<4x384xi1>
    %50 = vector.broadcast %cst_15 : f32 to vector<4x384xf32>
    %51 = arith.select %49, %45, %50 : vector<4x384xi1>, vector<4x384xf32>
    %52 = arith.truncf %51 : vector<4x384xf32> to vector<4x384xbf16>
    %c12 = arith.constant 12 : index
    %c0_16 = arith.constant 0 : index
    %53 = vector.load %arg8[%c12, %c0_16] : memref<36x384xbf16, #tpu.memory_space<vmem>>, vector<4x384xbf16>
    tpu.vector_store %arg8[%c12, %c0_16], %52 {strides = array<i32>} : memref<36x384xbf16, #tpu.memory_space<vmem>>, vector<4x384xbf16>,
    %54 = arith.truncf %17 : vector<4x384xf32> to vector<4x384xbf16>
    %c16 = arith.constant 16 : index
    %c0_17 = arith.constant 0 : index
    %55 = vector.load %arg8[%c16, %c0_17] : memref<36x384xbf16, #tpu.memory_space<vmem>>, vector<4x384xbf16>
    tpu.vector_store %arg8[%c16, %c0_17], %54 {strides = array<i32>} : memref<36x384xbf16, #tpu.memory_space<vmem>>, vector<4x384xbf16>,
    %c383_i32 = arith.constant 383 : i32
    %56 = tpu.dynamic_rotate %17 by %c383_i32 dim 1 : vector<4x384xf32>, i32 -> vector<4x384xf32>
    %c127_i32 = arith.constant 127 : i32
    %57 = vector.broadcast %c127_i32 : i32 to vector<1x384xi32>
    %58 = arith.cmpi slt, %16, %57 : vector<1x384xi32>
    %cst_18 = arith.constant 0.000000e+00 : f32
    %59 = vector.shape_cast %58 : vector<1x384xi1> to vector<1x384xi1>
    %60 = vector.broadcast %59 : vector<1x384xi1> to vector<4x384xi1>
    %61 = vector.broadcast %cst_18 : f32 to vector<4x384xf32>
    %62 = arith.select %60, %56, %61 : vector<4x384xi1>, vector<4x384xf32>
    %63 = arith.truncf %62 : vector<4x384xf32> to vector<4x384xbf16>
    %c20 = arith.constant 20 : index
    %c0_19 = arith.constant 0 : index
    %64 = vector.load %arg8[%c20, %c0_19] : memref<36x384xbf16, #tpu.memory_space<vmem>>, vector<4x384xbf16>
    tpu.vector_store %arg8[%c20, %c0_19], %63 {strides = array<i32>} : memref<36x384xbf16, #tpu.memory_space<vmem>>, vector<4x384xbf16>,
    %c382_i32 = arith.constant 382 : i32
    %65 = tpu.dynamic_rotate %17 by %c382_i32 dim 1 : vector<4x384xf32>, i32 -> vector<4x384xf32>
    %c126_i32 = arith.constant 126 : i32
    %66 = vector.broadcast %c126_i32 : i32 to vector<1x384xi32>
    %67 = arith.cmpi slt, %16, %66 : vector<1x384xi32>
    %cst_20 = arith.constant 0.000000e+00 : f32
    %68 = vector.shape_cast %67 : vector<1x384xi1> to vector<1x384xi1>
    %69 = vector.broadcast %68 : vector<1x384xi1> to vector<4x384xi1>
    %70 = vector.broadcast %cst_20 : f32 to vector<4x384xf32>
    %71 = arith.select %69, %65, %70 : vector<4x384xi1>, vector<4x384xf32>
    %72 = arith.truncf %71 : vector<4x384xf32> to vector<4x384xbf16>
    %c24 = arith.constant 24 : index
    %c0_21 = arith.constant 0 : index
    %73 = vector.load %arg8[%c24, %c0_21] : memref<36x384xbf16, #tpu.memory_space<vmem>>, vector<4x384xbf16>
    tpu.vector_store %arg8[%c24, %c0_21], %72 {strides = array<i32>} : memref<36x384xbf16, #tpu.memory_space<vmem>>, vector<4x384xbf16>,
    %c381_i32 = arith.constant 381 : i32
    %74 = tpu.dynamic_rotate %17 by %c381_i32 dim 1 : vector<4x384xf32>, i32 -> vector<4x384xf32>
    %c125_i32 = arith.constant 125 : i32
    %75 = vector.broadcast %c125_i32 : i32 to vector<1x384xi32>
    %76 = arith.cmpi slt, %16, %75 : vector<1x384xi32>
    %cst_22 = arith.constant 0.000000e+00 : f32
    %77 = vector.shape_cast %76 : vector<1x384xi1> to vector<1x384xi1>
    %78 = vector.broadcast %77 : vector<1x384xi1> to vector<4x384xi1>
    %79 = vector.broadcast %cst_22 : f32 to vector<4x384xf32>
    %80 = arith.select %78, %74, %79 : vector<4x384xi1>, vector<4x384xf32>
    %81 = arith.truncf %80 : vector<4x384xf32> to vector<4x384xbf16>
    %c28 = arith.constant 28 : index
    %c0_23 = arith.constant 0 : index
    %82 = vector.load %arg8[%c28, %c0_23] : memref<36x384xbf16, #tpu.memory_space<vmem>>, vector<4x384xbf16>
    tpu.vector_store %arg8[%c28, %c0_23], %81 {strides = array<i32>} : memref<36x384xbf16, #tpu.memory_space<vmem>>, vector<4x384xbf16>,
    %c380_i32 = arith.constant 380 : i32
    %83 = tpu.dynamic_rotate %17 by %c380_i32 dim 1 : vector<4x384xf32>, i32 -> vector<4x384xf32>
    %c124_i32 = arith.constant 124 : i32
    %84 = vector.broadcast %c124_i32 : i32 to vector<1x384xi32>
    %85 = arith.cmpi slt, %16, %84 : vector<1x384xi32>
    %cst_24 = arith.constant 0.000000e+00 : f32
    %86 = vector.shape_cast %85 : vector<1x384xi1> to vector<1x384xi1>
    %87 = vector.broadcast %86 : vector<1x384xi1> to vector<4x384xi1>
    %88 = vector.broadcast %cst_24 : f32 to vector<4x384xf32>
    %89 = arith.select %87, %83, %88 : vector<4x384xi1>, vector<4x384xf32>
    %90 = arith.truncf %89 : vector<4x384xf32> to vector<4x384xbf16>
    %c32 = arith.constant 32 : index
    %c0_25 = arith.constant 0 : index
    %91 = vector.load %arg8[%c32, %c0_25] : memref<36x384xbf16, #tpu.memory_space<vmem>>, vector<4x384xbf16>
    tpu.vector_store %arg8[%c32, %c0_25], %90 {strides = array<i32>} : memref<36x384xbf16, #tpu.memory_space<vmem>>, vector<4x384xbf16>,
    %c0_26 = arith.constant 0 : index
    %c0_27 = arith.constant 0 : index
    %92 = vector.load %arg2[%c0_26, %c0_27] : memref<8x36xbf16, #tpu.memory_space<vmem>>, vector<8x36xbf16>
    %c0_28 = arith.constant 0 : index
    %c0_29 = arith.constant 0 : index
    %93 = vector.load %arg8[%c0_28, %c0_29] : memref<36x384xbf16, #tpu.memory_space<vmem>>, vector<36x384xbf16>
    %cst_30 = arith.constant dense<0.000000e+00> : vector<8x384xf32>
    %94 = tpu.matmul %92, %93, %cst_30 {dimension_numbers = #tpu.dot_dimension_numbers<[1], [0], [0], [1], [0, 0, 1, 1], [], []>} : vector<8x36xbf16>, vector<36x384xbf16>, vector<8x384xf32> -> vector<8x384xf32>
    %c1_i32_31 = arith.constant 1 : i32
    %95 = tpu.dynamic_rotate %94 by %c1_i32_31 dim 1 : vector<8x384xf32>, i32 -> vector<8x384xf32>
    %c1_i32_32 = arith.constant 1 : i32
    %96 = vector.broadcast %c1_i32_32 : i32 to vector<1x384xi32>
    %97 = arith.cmpi sge, %16, %96 : vector<1x384xi32>
    %cst_33 = arith.constant 0.000000e+00 : f32
    %98 = vector.shape_cast %97 : vector<1x384xi1> to vector<1x384xi1>
    %99 = vector.broadcast %98 : vector<1x384xi1> to vector<8x384xi1>
    %100 = vector.broadcast %cst_33 : f32 to vector<8x384xf32>
    %101 = arith.select %99, %95, %100 : vector<8x384xi1>, vector<8x384xf32>
    %102 = arith.truncf %101 : vector<8x384xf32> to vector<8x384xbf16>
    %c0_34 = arith.constant 0 : index
    %c0_35 = arith.constant 0 : index
    %103 = vector.load %arg8[%c0_34, %c0_35] : memref<36x384xbf16, #tpu.memory_space<vmem>>, vector<8x384xbf16>
    tpu.vector_store %arg8[%c0_34, %c0_35], %102 {strides = array<i32>} : memref<36x384xbf16, #tpu.memory_space<vmem>>, vector<8x384xbf16>,
    %104 = arith.truncf %94 : vector<8x384xf32> to vector<8x384xbf16>
    %c8_36 = arith.constant 8 : index
    %c0_37 = arith.constant 0 : index
    %105 = vector.load %arg8[%c8_36, %c0_37] : memref<36x384xbf16, #tpu.memory_space<vmem>>, vector<8x384xbf16>
    tpu.vector_store %arg8[%c8_36, %c0_37], %104 {strides = array<i32>} : memref<36x384xbf16, #tpu.memory_space<vmem>>, vector<8x384xbf16>,
    %c383_i32_38 = arith.constant 383 : i32
    %106 = tpu.dynamic_rotate %94 by %c383_i32_38 dim 1 : vector<8x384xf32>, i32 -> vector<8x384xf32>
    %c127_i32_39 = arith.constant 127 : i32
    %107 = vector.broadcast %c127_i32_39 : i32 to vector<1x384xi32>
    %108 = arith.cmpi slt, %16, %107 : vector<1x384xi32>
    %cst_40 = arith.constant 0.000000e+00 : f32
    %109 = vector.shape_cast %108 : vector<1x384xi1> to vector<1x384xi1>
    %110 = vector.broadcast %109 : vector<1x384xi1> to vector<8x384xi1>
    %111 = vector.broadcast %cst_40 : f32 to vector<8x384xf32>
    %112 = arith.select %110, %106, %111 : vector<8x384xi1>, vector<8x384xf32>
    %113 = arith.truncf %112 : vector<8x384xf32> to vector<8x384xbf16>
    %c16_41 = arith.constant 16 : index
    %c0_42 = arith.constant 0 : index
    %114 = vector.load %arg8[%c16_41, %c0_42] : memref<36x384xbf16, #tpu.memory_space<vmem>>, vector<8x384xbf16>
    tpu.vector_store %arg8[%c16_41, %c0_42], %113 {strides = array<i32>} : memref<36x384xbf16, #tpu.memory_space<vmem>>, vector<8x384xbf16>,
    %c382_i32_43 = arith.constant 382 : i32
    %115 = tpu.dynamic_rotate %94 by %c382_i32_43 dim 1 : vector<8x384xf32>, i32 -> vector<8x384xf32>
    %c126_i32_44 = arith.constant 126 : i32
    %116 = vector.broadcast %c126_i32_44 : i32 to vector<1x384xi32>
    %117 = arith.cmpi slt, %16, %116 : vector<1x384xi32>
    %cst_45 = arith.constant 0.000000e+00 : f32
    %118 = vector.shape_cast %117 : vector<1x384xi1> to vector<1x384xi1>
    %119 = vector.broadcast %118 : vector<1x384xi1> to vector<8x384xi1>
    %120 = vector.broadcast %cst_45 : f32 to vector<8x384xf32>
    %121 = arith.select %119, %115, %120 : vector<8x384xi1>, vector<8x384xf32>
    %122 = arith.truncf %121 : vector<8x384xf32> to vector<8x384xbf16>
    %c24_46 = arith.constant 24 : index
    %c0_47 = arith.constant 0 : index
    %123 = vector.load %arg8[%c24_46, %c0_47] : memref<36x384xbf16, #tpu.memory_space<vmem>>, vector<8x384xbf16>
    tpu.vector_store %arg8[%c24_46, %c0_47], %122 {strides = array<i32>} : memref<36x384xbf16, #tpu.memory_space<vmem>>, vector<8x384xbf16>,
    %c0_48 = arith.constant 0 : index
    %c0_49 = arith.constant 0 : index
    %124 = vector.load %arg3[%c0_48, %c0_49] : memref<8x32xbf16, #tpu.memory_space<vmem>>, vector<8x32xbf16>
    %c0_50 = arith.constant 0 : index
    %c0_51 = arith.constant 0 : index
    %125 = vector.load %arg8[%c0_50, %c0_51] : memref<36x384xbf16, #tpu.memory_space<vmem>>, vector<32x384xbf16>
    %cst_52 = arith.constant dense<0.000000e+00> : vector<8x384xf32>
    %126 = tpu.matmul %124, %125, %cst_52 {dimension_numbers = #tpu.dot_dimension_numbers<[1], [0], [0], [1], [0, 0, 1, 1], [], []>} : vector<8x32xbf16>, vector<32x384xbf16>, vector<8x384xf32> -> vector<8x384xf32>
    %127 = arith.truncf %126 : vector<8x384xf32> to vector<8x384xbf16>
    %c0_53 = arith.constant 0 : index
    %c0_54 = arith.constant 0 : index
    %128 = vector.load %arg8[%c0_53, %c0_54] : memref<36x384xbf16, #tpu.memory_space<vmem>>, vector<8x384xbf16>
    tpu.vector_store %arg8[%c0_53, %c0_54], %127 {strides = array<i32>} : memref<36x384xbf16, #tpu.memory_space<vmem>>, vector<8x384xbf16>,
    %c383_i32_55 = arith.constant 383 : i32
    %129 = tpu.dynamic_rotate %126 by %c383_i32_55 dim 1 : vector<8x384xf32>, i32 -> vector<8x384xf32>
    %c127_i32_56 = arith.constant 127 : i32
    %130 = vector.broadcast %c127_i32_56 : i32 to vector<1x384xi32>
    %131 = arith.cmpi slt, %16, %130 : vector<1x384xi32>
    %cst_57 = arith.constant 0.000000e+00 : f32
    %132 = vector.shape_cast %131 : vector<1x384xi1> to vector<1x384xi1>
    %133 = vector.broadcast %132 : vector<1x384xi1> to vector<8x384xi1>
    %134 = vector.broadcast %cst_57 : f32 to vector<8x384xf32>
    %135 = arith.select %133, %129, %134 : vector<8x384xi1>, vector<8x384xf32>
    %136 = arith.truncf %135 : vector<8x384xf32> to vector<8x384xbf16>
    %c8_58 = arith.constant 8 : index
    %c0_59 = arith.constant 0 : index
    %137 = vector.load %arg8[%c8_58, %c0_59] : memref<36x384xbf16, #tpu.memory_space<vmem>>, vector<8x384xbf16>
    tpu.vector_store %arg8[%c8_58, %c0_59], %136 {strides = array<i32>} : memref<36x384xbf16, #tpu.memory_space<vmem>>, vector<8x384xbf16>,
    %c0_60 = arith.constant 0 : index
    %c0_61 = arith.constant 0 : index
    %138 = vector.load %arg4[%c0_60, %c0_61] : memref<8x16xbf16, #tpu.memory_space<vmem>>, vector<8x16xbf16>
    %c0_62 = arith.constant 0 : index
    %c0_63 = arith.constant 0 : index
    %139 = vector.load %arg8[%c0_62, %c0_63] : memref<36x384xbf16, #tpu.memory_space<vmem>>, vector<16x384xbf16>
    %cst_64 = arith.constant dense<0.000000e+00> : vector<8x384xf32>
    %140 = tpu.matmul %138, %139, %cst_64 {dimension_numbers = #tpu.dot_dimension_numbers<[1], [0], [0], [1], [0, 0, 1, 1], [], []>} : vector<8x16xbf16>, vector<16x384xbf16>, vector<8x384xf32> -> vector<8x384xf32>
    %c0_65 = arith.constant 0 : index
    %c0_66 = arith.constant 0 : index
    %141 = vector.load %arg5[%c0_65, %c0_66] : memref<8x4xbf16, #tpu.memory_space<vmem>>, vector<8x4xbf16>
    %142 = arith.truncf %17 : vector<4x384xf32> to vector<4x384xbf16>
    %cst_67 = arith.constant dense<0.000000e+00> : vector<8x384xf32>
    %143 = tpu.matmul %141, %142, %cst_67 {dimension_numbers = #tpu.dot_dimension_numbers<[1], [0], [0], [1], [0, 0, 1, 1], [], []>} : vector<8x4xbf16>, vector<4x384xbf16>, vector<8x384xf32> -> vector<8x384xf32>
    %c0_68 = arith.constant 0 : index
    %c0_69 = arith.constant 0 : index
    %144 = vector.load %arg6[%c0_68, %c0_69] : memref<8x1xf32, #tpu.memory_space<vmem>>, vector<8x1xf32>
    %145 = vector.broadcast %144 : vector<8x1xf32> to vector<8x384xf32>
    %146 = arith.addf %143, %145 : vector<8x384xf32>
    %cst_70 = arith.constant 0.000000e+00 : f32
    %147 = vector.broadcast %cst_70 : f32 to vector<8x384xf32>
    %148 = arith.maximumf %146, %147 : vector<8x384xf32>
    %149 = arith.addf %140, %148 : vector<8x384xf32>
    %c0_71 = arith.constant 0 : index
    %c0_72 = arith.constant 0 : index
    %150 = vector.load %arg7[%c0_71, %c0_72] : memref<8x384xf32, #tpu.memory_space<vmem>>, vector<8x384xf32>
    tpu.vector_store %arg7[%c0_71, %c0_72], %149 {strides = array<i32>} : memref<8x384xf32, #tpu.memory_space<vmem>>, vector<8x384xf32>,
    return
  }
  func.func @transform_0(%arg0: i32) -> (i32, i32) {
    %c0_i32 = arith.constant 0 : i32
    %c0_i32_0 = arith.constant 0 : i32
    return %c0_i32, %arg0 : i32, i32
  }
  func.func @transform_1(%arg0: i32) -> (i32, i32) {
    %c0_i32 = arith.constant 0 : i32
    %c0_i32_0 = arith.constant 0 : i32
    %c0_i32_1 = arith.constant 0 : i32
    return %c0_i32, %c0_i32_0 : i32, i32
  }
  func.func @transform_2(%arg0: i32) -> (i32, i32) {
    %c0_i32 = arith.constant 0 : i32
    %c0_i32_0 = arith.constant 0 : i32
    %c0_i32_1 = arith.constant 0 : i32
    return %c0_i32, %c0_i32_0 : i32, i32
  }
  func.func @transform_3(%arg0: i32) -> (i32, i32) {
    %c0_i32 = arith.constant 0 : i32
    %c0_i32_0 = arith.constant 0 : i32
    %c0_i32_1 = arith.constant 0 : i32
    return %c0_i32, %c0_i32_0 : i32, i32
  }
  func.func @transform_4(%arg0: i32) -> (i32, i32) {
    %c0_i32 = arith.constant 0 : i32
    %c0_i32_0 = arith.constant 0 : i32
    %c0_i32_1 = arith.constant 0 : i32
    return %c0_i32, %c0_i32_0 : i32, i32
  }
  func.func @transform_5(%arg0: i32) -> (i32, i32) {
    %c0_i32 = arith.constant 0 : i32
    %c0_i32_0 = arith.constant 0 : i32
    %c0_i32_1 = arith.constant 0 : i32
    return %c0_i32, %c0_i32_0 : i32, i32
  }
  func.func @transform_6(%arg0: i32) -> (i32, i32) {
    %c0_i32 = arith.constant 0 : i32
    %c0_i32_0 = arith.constant 0 : i32
    return %c0_i32, %arg0 : i32, i32
  }
}

</mosaic_0001>

<bundles_post_ra>
// kernel: tpu_custom_call.1
= control target key start
LH: loop header
LB: loop body
LE: loop exit
PB: predicated region body
PF: predicated region fallthrough
CT: control target
= control target key end

     0   :  { %11 = vsyncpa [#allocation4], 0  ;;  %s2211_s0 = inlined_call_operand.hbm [shape: f32[4,768], index: 0, kind: input, shape index: {}]   ;;  %s2212_s1 = inlined_call_operand.vmem [shape: bf16[8,36], index: 1, kind: input, shape index: {}]   ;;  %s2213_s2 = inlined_call_operand.vmem [shape: bf16[8,32], index: 2, kind: input, shape index: {}]   ;;  %s2214_s3 = inlined_call_operand.vmem [shape: bf16[8,16], index: 3, kind: input, shape index: {}]   ;;  %s2215_s4 = inlined_call_operand.vmem [shape: bf16[8,4], index: 4, kind: input, shape index: {}]   ;;  %s2216_s5 = inlined_call_operand.vmem [shape: f32[8,1], index: 5, kind: input, shape index: {}]   ;;  %s2217_s6 = inlined_call_operand.hbm [shape: f32[8,768], index: 6, kind: output, shape index: {}]  }
   0x1   :  { %13 = vsyncpa [#allocation4 + $0x1], 0 }
   0x2   :  { %14 = vsyncpa [#allocation5], 0 }
   0x3   :  { %16 = vsyncpa [#allocation5 + $0x1], 0  ;;  %s1788_s21 = smov 0   ;;  %s1790_s22 = smov 0  }
   0x4   :  { %s1792_s23 = smov 0   ;;  %s1794_s24 = smov 0  }
   0x5 LB: > { %s1809_s25 = sadd.s32 4294967295, %s1737_s24   ;;  %s1343_s26 = sadd.s32 4294967294, %s1737_s24   ;;  %s1737_s24 = sphi %s1794_s24, %s2234_s24   ;;  %s1733_s23 = sphi %s1792_s23, %s2233_s23   ;;  %s1729_s22 = sphi %s1790_s22, %s2232_s22   ;;  %s1725_s21 = sphi %s1788_s21, %s2231_s21  }
   0x6   : > { %s1813_s27 = sadd.s32 1, %s1737_s24   ;;  %s29_s28 = sadd.s32 1, %s1733_s23 }
   0x7   : > { %s26_s29 = ssub.s32 %s1737_s24, %s1813_s27  ;;  %p36_p0 = scmp.ne.s32.totalorder %s1733_s23, %s1729_s22 }
   0x8   : > { %p27_p1 = scmp.eq.s32.totalorder %s26_s29, 0  ;;  %p37_p2 = scmp.eq.s32.totalorder %s1737_s24, 0 }
   0x9   : > { %p42_p3 = scmp.ne.s32.totalorder %s1729_s22, %s1725_s21  ;;  %p43_p4 = scmp.eq.s32.totalorder %s1809_s25, 0 }
   0xa   : > { %s1825_s30 = scalar_select %p27_p1, %s1733_s23, %s29_s28  }
   0xb   : > { %p38_p5 = por %p37_p2, %p36_p0  ;;  %p1827_p6 = por %p43_p4, %p42_p3 }
   0xc   : > { %p171_p7 = scmp.eq.s32.totalorder %s1809_s25, 1  ;;  %p177_p8 = scmp.eq.s32.totalorder %s1343_s26, 1 }
   0xd   : > { %p1497_p10 = scmp.lt.s32.totalorder %s1737_s24, 2  ;;  %s212_s10 = sand.u32 1, %s1733_s23  }
   0xe   : > { %p1834_p11 = por %p171_p7, %p36_p0  ;;  %p1838_p12 = por %p177_p8, %p42_p3 }
   0xf   : > { %s1409_s11 = smul.u32 192, %s1737_s24  ;;  %p1849_p13 = pnand %p1497_p10, %p38_p5 }
  0x10   : > { %s2222_s8 = scalar_select %p1834_p11, 1, 0 }
  0x11   : > { %s2223_s9 = scalar_select %p1838_p12, 1, 0 }
  0x12   : > { %s1482_s12 = smul.u32 12, %s212_s10  ;;  %s1847_s15 = scalar_lea.hbm %s2211_s0, %s1409_s11 }
  0x13   : > { %s213_s19 = scalar_lea.sflag [#allocation4], %s212_s10  ;;  %s1641_s20 = scalar_lea.hbm %s1847_s15, 192 }
  0x14   : > { %s216_s17 = scalar_lea.vmem [#allocation3], %s1482_s12  ;;  %p1642_p2 = scmp.ne.s32.totalorder %s1847_s15, %s1641_s20 }
  0x15   : > { %s224_s18 = sshll.u32 %s216_s17, 4  ;;  %p1643_p3 = pneg %p1849_p13  ;;  %s1854_s18 = int_to_ptr.vmem [resolvable:$true] %s224_s18 }
  0x16   : > { %s1646_s29 = scalar_lea.hbm %s2211_s0, 384  ;;  %p1647_p7 = scmp.lt.u32.totalorder %s1847_s15, %s2211_s0 }
  0x17   : > { %p1644_p4 = pnand %p1643_p3, %p1642_p2  ;;  %p1648_p8 = scmp.lt.u32.totalorder %s1646_s29, %s1641_s20 }
  0x18   : > { %p1650_p9 = scmp.lt.u32.totalorder %s1641_s20, %s1847_s15 }
  0x19   : > { %p1645_p5 = pneg %p1644_p4  ;;  %p1649_p10 = por %p1648_p8, %p1647_p7 }
  0x1b   : > { %p1651_p0 = por %p1650_p9, %p1649_p10 }
  0x1d   : > { %p1652_p1 = pnand %p1651_p0, %p1645_p5 }
  0x1f   : > { %1655 = shalt.err (!%p1652_p1)
}
  0x20   : > { %s1656_s10 = scalar_lea.vmem %s1854_s18, 192  ;;  %s1739_s12 = smov [#allocation3]  }
  0x21   : > { %p1657_p2 = scmp.ne.s32.totalorder %s1854_s18, %s1656_s10  ;;  %s1661_s14 = sshll.u32 %s1739_s12, 4  ;;  %s1662_s14 = int_to_ptr.vmem [resolvable:$false] %s1661_s14 }
  0x22   : > { %s1663_s17 = scalar_lea.vmem %s1662_s14, 384  ;;  %p1664_p11 = scmp.lt.s32.totalorder %s1854_s18, %s1662_s14 }
  0x23   : > { %p1659_p4 = pnand %p1657_p2, %p1643_p3  ;;  %p1665_p7 = scmp.lt.s32.totalorder %s1663_s17, %s1656_s10 }
  0x25   : > { %p1660_p12 = pneg %p1659_p4  ;;  %p1666_p8 = por %p1665_p7, %p1664_p11 }
  0x27   : > { %p1667_p9 = pnand %p1666_p8, %p1660_p12 }
  0x29   : > { %1670 = shalt.err (!%p1667_p9)
}
  0x2a   : > { %1492 = dma.hbm_to_vmem [thread:$0]  (!%p1849_p13), %s1847_s15, 192, %s1854_s18, %s213_s19  }
  0x2b   : > { %p2225_p0 = scmp.lt.s32.totalorder %s1737_s24, 3  ;;  %p2226_p1 = scmp.ge.s32.totalorder %s1737_s24, 1 }
  0x2d   : > { %p230_p3 = pnand %p2226_p1, %p2225_p0 }
  0x2e   : > { %s1887_s20 = sand.u32 (!%p230_p3), 1, %s1729_s22  }
  0x2f   : > { %233 = sbr.rel (%p230_p3) target bundleno = 1144 (0x478), region = 44  ;;  %s236_s28 = scalar_lea.sflag (!%p230_p3), [#allocation4], %s1887_s20 }
  0x30   : > { %s1483_s26 = smul.u32 (!%p230_p3), 12, %s1887_s20 }
  0x32   : > { %s239_s29 = scalar_lea.vmem (!%p230_p3), [#allocation3], %s1483_s26 }
  0x36   : > { %1716 = dma.done.wait (%p1827_p6), %s236_s28, 192  }
  0x37   : > { %1718 = vsyncadd (%p1827_p6), %s236_s28, 4294967104  ;;  %v312_v0 = vld [vmem:[%s239_s29 + $0x8] sm:$0xf]  ;;  %v1895_v1 = vld [vmem:[%s239_s29] sm:$0xff]  ;;  %s1740_s15 = smov 1   ;;  %s1741_s16 = smov 3   ;;  %v271_v8 = vlaneseq }
  0x38   : > { %433 = vrot.lane.b32.xlu1 %v312_v0, %s1740_s15  ;;  %357 = vrot.lane.b32.xlu0 %v312_v0, %s1741_s16  ;;  %v1900_v2 = vcombine.high %v1895_v1, %v1895_v1  ;;  %s1742_s18 = smov 4   ;;  %s1743_s7 = smov 2   ;;  %v1907_v5 = vpack.c.bf16 %v312_v0, %v312_v0  ;;  %v1745_v6 = vmov 0.0   ;;  %v1749_v7 = vmov 0  }
  0x39   : > { %s1744_s19 = smov 127   ;;  %1452 = vmatprep.subr.bf16.mxu1 %v1745_v6  ;;  %s1746_s11 = smov 125   ;;  %732 = vmatprep.mubr.bf16.mxu0 %v1749_v7  ;;  %vm2219_vm0 = vmmov 0   ;;  %v1919_v9 = vand.u32 127, %v271_v8 }
  0x3a   : > { %v1542_v3 = vpack.i.bf16 %v1900_v2, %v1895_v1  ;;  %v1418_v4 = vpack.c.bf16 %v1900_v2, %v1895_v1  ;;  %482 = vst [vmem:[#allocation2 + $0x20] sm:$0x3] %v1907_v5  ;;  %s1747_s13 = smov 126   ;;  %s1748_s10 = smov 124   ;;  %1458 = vmatprep.mubr.msk.bf16.mxu1 %vm2219_vm0, %v1745_v6  ;;  %1602 = vset.pattern.permute.xlu0 %v1749_v7 }
  0x3b   : > { %v273_v10 = vadd.s32 128, %v1919_v9  ;;  %v274_v11 = vadd.s32 256, %v1919_v9  ;;  %vm359_vm1 = vcmp.lt.s32.totalorder %v1919_v9, 3  ;;  %vm363_vm2 = vcmp.ge.s32.totalorder %v1919_v9, 3  ;;  %p2228_p11 = scmp.ne.s32.totalorder %s2222_s8, 0  ;;  %s1752_s28 = smov [#allocation6]  }
  0x3c   : > { %320 = vrot.lane.b32.xlu1 %v312_v0, %s1742_s18  ;;  %1543 = vrot.lane.b32.xlu0 %v1542_v3, %s1741_s16  ;;  %481 = vst [vmem:[#allocation2 + $0x18] sm:$0x33] %v1418_v4  ;;  %vm435_vm3 = vcmp.lt.s32.totalorder %v1919_v9, 1  ;;  %vm439_vm5 = vcmp.ge.s32.totalorder %v1919_v9, 1  ;;  %vm322_vm6 = vcmp.lt.s32.totalorder %v1919_v9, 4  ;;  %vm326_vm7 = vcmp.ge.s32.totalorder %v1919_v9, 4 }
  0x3d   : > { %v1923_v14 = vand.u32 127, %v273_v10  ;;  %v1925_v15 = vand.u32 127, %v274_v11  ;;  %vm398_vm13 = vcmp.lt.s32.totalorder %v1919_v9, 2  ;;  %vm402_vm14 = vcmp.ge.s32.totalorder %v1919_v9, 2  ;;  %s1675_s29 = sshll.u32 %s1752_s28, 4  ;;  %s1676_s29 = int_to_ptr.vmem [resolvable:$false] %s1675_s29 }
  0x3f   : > { %vm364_vm4 = vcmp.ge.s32.totalorder %v1923_v14, 3  ;;  %vm365_vm8 = vcmp.ge.s32.totalorder %v1925_v15, 3  ;;  %vm440_vm9 = vcmp.ge.s32.totalorder %v1923_v14, 1  ;;  %vm441_vm10 = vcmp.ge.s32.totalorder %v1925_v15, 1 }
  0x40   : > { %1548 = vrot.lane.b32.xlu1 %v1542_v3, %s1740_s15  ;;  %1553 = vrot.lane.b32.xlu0 %v1542_v3, %s1742_s18  ;;  %vm327_vm11 = vcmp.ge.s32.totalorder %v1923_v14, 4  ;;  %vm328_vm12 = vcmp.ge.s32.totalorder %v1925_v15, 4  ;;  %vm403_vm15 = vcmp.ge.s32.totalorder %v1923_v14, 2  ;;  %vm404_vm0 = vcmp.ge.s32.totalorder %v1925_v15, 2 }
  0x44   : > { %1558 = vrot.lane.b32.xlu0 %v1542_v3, %s1743_s7  ;;  %396 = vrot.lane.b32.xlu1 %v312_v0, %s1743_s7 }
  0x48   : > { %1563 = vrot.lane.b32.xlu0 %v1542_v3, %s1744_s19  ;;  %487 = vrot.lane.b32.xlu1 %v312_v0, %s1744_s19 }
  0x4c   : > { %1568 = vrot.lane.b32.xlu0 %v1542_v3, %s1746_s11  ;;  %563 = vrot.lane.b32.xlu1 %v312_v0, %s1746_s11 }
  0x50   : > { %1573 = vrot.lane.b32.xlu0 %v1542_v3, %s1747_s13  ;;  %526 = vrot.lane.b32.xlu1 %v312_v0, %s1747_s13 }
  0x54   : > { %1578 = vrot.lane.b32.xlu0 %v1542_v3, %s1748_s10  ;;  %602 = vrot.lane.b32.xlu1 %v312_v0, %s1748_s10 }
  0xaa   : > { %v434_v12 = vpop.permute.xlu1 %433  ;;  %v358_v13 = vpop.permute.xlu0 %357 }
  0xae   : > { %v321_v16 = vpop.permute.xlu1 %320  ;;  %v1544_v17 = vpop.permute.xlu0 %1543 }
  0xaf   : > { %v1546_v18 = vunpack.i.h.bf16 %v1544_v17  ;;  %v1545_v19 = vunpack.i.l.bf16 %v1544_v17 }
  0xb1   : > { %v360_v20 = vsel %vm359_vm1, %v1546_v18, %v358_v13  ;;  %v361_v21 = vsel %vm359_vm1, %v1545_v19, %v1546_v18  ;;  %v362_v22 = vsel %vm359_vm1, %v358_v13, %v1545_v19  ;;  %vm489_vm1 = vcmp.lt.s32.totalorder %v1919_v9, 127 }
  0xb2   : > { %v374_v23 = vsel %vm365_vm8, %v360_v20, 0.0  ;;  %v372_v24 = vsel %vm363_vm2, %v362_v22, 0.0  ;;  %v373_v25 = vsel %vm364_vm4, %v361_v21, 0.0  ;;  %v1549_v26 = vpop.permute.xlu1 %1548  ;;  %v1554_v27 = vpop.permute.xlu0 %1553  ;;  %vm494_vm8 = vcmp.lt.s32.totalorder %v1923_v14, 127 }
  0xb3   : > { %v1413_v28 = vpack.c.bf16 %v374_v23, %v374_v23  ;;  %v1412_v29 = vpack.c.bf16 %v373_v25, %v372_v24  ;;  %v1551_v30 = vunpack.i.h.bf16 %v1549_v26  ;;  %v1550_v31 = vunpack.i.l.bf16 %v1549_v26 }
  0xb4   : > { %v1556_v32 = vunpack.i.h.bf16 %v1554_v27  ;;  %v1555_v33 = vunpack.i.l.bf16 %v1554_v27  ;;  %vm495_vm2 = vcmp.lt.s32.totalorder %v1925_v15, 127  ;;  %vm565_vm4 = vcmp.lt.s32.totalorder %v1919_v9, 125 }
  0xb5   : > { %v387_v34 = vrot.slane %v1413_v28, 6  ;;  %v386_v35 = vrot.slane %v1412_v29, 6  ;;  %v436_v36 = vsel %vm435_vm3, %v1551_v30, %v434_v12  ;;  %v437_v37 = vsel %vm435_vm3, %v1550_v31, %v1551_v30 }
  0xb6   : > { %v450_v38 = vsel %vm441_vm10, %v436_v36, 0.0  ;;  %v438_v39 = vsel %vm435_vm3, %v434_v12, %v1550_v31  ;;  %v449_v40 = vsel %vm440_vm9, %v437_v37, 0.0  ;;  %v323_v41 = vsel %vm322_vm6, %v1556_v32, %v321_v16  ;;  %v1559_v42 = vpop.permute.xlu0 %1558  ;;  %v397_v43 = vpop.permute.xlu1 %396 }
  0xb7   : > { %391 = vst [vmem:[#allocation2 + $0x8] sm:$0xc] %v387_v34  ;;  %390 = vst [vmem:[#allocation2] sm:$0xcc] %v386_v35  ;;  %v1417_v44 = vpack.c.bf16 %v450_v38, %v450_v38  ;;  %v448_v45 = vsel %vm439_vm5, %v438_v39, 0.0  ;;  %v337_v46 = vsel %vm328_vm12, %v323_v41, 0.0  ;;  %v324_v47 = vsel %vm322_vm6, %v1555_v33, %v1556_v32 }
  0xb8   : > { %v1416_v48 = vpack.c.bf16 %v449_v40, %v448_v45  ;;  %v1411_v49 = vpack.c.bf16 %v337_v46, %v337_v46  ;;  %v325_v50 = vsel %vm322_vm6, %v321_v16, %v1555_v33  ;;  %v336_v51 = vsel %vm327_vm11, %v324_v47, 0.0 }
  0xb9   : > { %v463_v52 = vrot.slane %v1417_v44, 6  ;;  %v335_v53 = vsel %vm326_vm7, %v325_v50, 0.0  ;;  %v1561_v54 = vunpack.i.h.bf16 %v1559_v42  ;;  %v1560_v55 = vunpack.i.l.bf16 %v1559_v42 }
  0xba   : > { %v462_v56 = vrot.slane %v1416_v48, 6  ;;  %352 = vst [vmem:[#allocation2 + $0x8] sm:$0x3] %v1411_v49  ;;  %v1410_v57 = vpack.c.bf16 %v336_v51, %v335_v53  ;;  %v1564_v58 = vpop.permute.xlu0 %1563  ;;  %v488_v59 = vpop.permute.xlu1 %487  ;;  %vm570_vm6 = vcmp.lt.s32.totalorder %v1923_v14, 125  ;;  %vm528_vm7 = vcmp.lt.s32.totalorder %v1919_v9, 126 }
  0xbb   : > { %467 = vst [vmem:[#allocation2 + $0x14] sm:$0xc] %v463_v52  ;;  %v399_v60 = vsel %vm398_vm13, %v1561_v54, %v397_v43  ;;  %v400_v61 = vsel %vm398_vm13, %v1560_v55, %v1561_v54  ;;  %v401_v62 = vsel %vm398_vm13, %v397_v43, %v1560_v55  ;;  %v1566_v63 = vunpack.i.h.bf16 %v1564_v58 }
  0xbc   : > { %466 = vst [vmem:[#allocation2 + $0xc] sm:$0xcc] %v462_v56  ;;  %351 = vst [vmem:[#allocation2] sm:$0x33] %v1410_v57  ;;  %v411_v0 = vsel %vm402_vm14, %v401_v62, 0.0  ;;  %v412_v3 = vsel %vm403_vm15, %v400_v61, 0.0  ;;  %v1565_v8 = vunpack.i.l.bf16 %v1564_v58 }
  0xbd   : > { %v413_v4 = vsel %vm404_vm0, %v399_v60, 0.0  ;;  %v1414_v10 = vpack.c.bf16 %v412_v3, %v411_v0  ;;  %v490_v12 = vsel %vm489_vm1, %v1566_v63, %v488_v59  ;;  %vm571_vm0 = vcmp.lt.s32.totalorder %v1925_v15, 125 }
  0xbe   : > { %v1415_v11 = vpack.c.bf16 %v413_v4, %v413_v4  ;;  %v491_v13 = vsel %vm489_vm1, %v1565_v8, %v1566_v63  ;;  %v492_v16 = vsel %vm489_vm1, %v488_v59, %v1565_v8  ;;  %v503_v17 = vsel %vm494_vm8, %v490_v12, 0.0  ;;  %v1569_v18 = vpop.permute.xlu0 %1568  ;;  %v564_v19 = vpop.permute.xlu1 %563 }
  0xbf   : > { %427 = vst [vmem:[#allocation2 + $0xc] sm:$0x33] %v1414_v10  ;;  %v502_v20 = vsel %vm489_vm1, %v491_v13, 0.0  ;;  %v504_v21 = vsel %vm495_vm2, %v492_v16, 0.0  ;;  %v1571_v22 = vunpack.i.h.bf16 %v1569_v18  ;;  %v1570_v23 = vunpack.i.l.bf16 %v1569_v18 }
  0xc0   : > { %428 = vst [vmem:[#allocation2 + $0x14] sm:$0x3] %v1415_v11  ;;  %v1420_v24 = vpack.c.bf16 %v503_v17, %v502_v20  ;;  %v1421_v25 = vpack.c.bf16 %v504_v21, %v504_v21  ;;  %vm533_vm11 = vcmp.lt.s32.totalorder %v1923_v14, 126  ;;  %vm534_vm12 = vcmp.lt.s32.totalorder %v1925_v15, 126  ;;  %v635_v20 = vld [vmem:[%s2212_s1] sm:$0xf] }
  0xc1   : > { %v566_v26 = vsel %vm565_vm4, %v1571_v22, %v564_v19  ;;  %v567_v27 = vsel %vm565_vm4, %v1570_v23, %v1571_v22  ;;  %v568_v28 = vsel %vm565_vm4, %v564_v19, %v1570_v23  ;;  %vm604_vm13 = vcmp.lt.s32.totalorder %v1919_v9, 124 }
  0xc2   : > { %v516_v29 = vrot.slane %v1420_v24, 6  ;;  %v517_v30 = vrot.slane %v1421_v25, 6  ;;  %v578_v31 = vsel %vm565_vm4, %v567_v27, 0.0  ;;  %v579_v32 = vsel %vm570_vm6, %v566_v26, 0.0  ;;  %v1574_v33 = vpop.permute.xlu0 %1573  ;;  %v527_v34 = vpop.permute.xlu1 %526 }
  0xc3   : > { %v580_v35 = vsel %vm571_vm0, %v568_v28, 0.0  ;;  %v1424_v36 = vpack.c.bf16 %v579_v32, %v578_v31  ;;  %v1576_v37 = vunpack.i.h.bf16 %v1574_v33  ;;  %v1575_v38 = vunpack.i.l.bf16 %v1574_v33 }
  0xc4   : > { %520 = vst [vmem:[#allocation2 + $0x18] sm:$0xcc] %v516_v29  ;;  %521 = vst [vmem:[#allocation2 + $0x20] sm:$0xc] %v517_v30  ;;  %v1425_v39 = vpack.c.bf16 %v580_v35, %v580_v35  ;;  %vm609_vm14 = vcmp.lt.s32.totalorder %v1923_v14, 124  ;;  %vm610_vm15 = vcmp.lt.s32.totalorder %v1925_v15, 124 }
  0xc5   : > { %v592_v40 = vrot.slane %v1424_v36, 6  ;;  %v529_v41 = vsel %vm528_vm7, %v1576_v37, %v527_v34  ;;  %v530_v42 = vsel %vm528_vm7, %v1575_v38, %v1576_v37  ;;  %v531_v43 = vsel %vm528_vm7, %v527_v34, %v1575_v38  ;;  %v1045_v15 = vld [vmem:[%s2214_s3] sm:$0xf] }
  0xc6   : > { %v593_v44 = vrot.slane %v1425_v39, 6  ;;  %v541_v45 = vsel %vm528_vm7, %v530_v42, 0.0  ;;  %v542_v46 = vsel %vm533_vm11, %v529_v41, 0.0  ;;  %v543_v47 = vsel %vm534_vm12, %v531_v43, 0.0  ;;  %v1579_v48 = vpop.permute.xlu0 %1578  ;;  %v603_v49 = vpop.permute.xlu1 %602  ;;  %v1604_v54 = vld [vmem:[#allocation2 + $0x4] ss:$12 sps:$4 sm:$0xff]  }
  0xc7   : > { %596 = vst [vmem:[#allocation2 + $0x24] sm:$0xcc] %v592_v40  ;;  %v1422_v50 = vpack.c.bf16 %v542_v46, %v541_v45  ;;  %v1423_v51 = vpack.c.bf16 %v543_v47, %v543_v47  ;;  %v1581_v52 = vunpack.i.h.bf16 %v1579_v48  ;;  %v1580_v53 = vunpack.i.l.bf16 %v1579_v48  ;;  %v1606_v55 = vld [vmem:[#allocation2 + $0x8] ss:$12 sps:$4 sm:$0xff]   ;;  %v1607_v56 = vld [vmem:[#allocation2] ss:$12 sps:$4 sm:$0xff]   ;;  %700 = vmatprep.subr.bf16.mxu0 %v1604_v54 }
  0xc8   : > { %597 = vst [vmem:[#allocation2 + $0x2c] sm:$0xc] %v593_v44  ;;  %1453 = vmatpush3.bf16.msra.mxu1 %v1606_v55  ;;  %701 = vmatpush1.bf16.msra.mxu0 %v1607_v56  ;;  %vm690_vm4 = vcmask 1041408   ;;  %vm686_vm6 = vcmask 293888   ;;  %vm2227_vm0 = vmmov 0  }
  0xc9   : > { %557 = vst [vmem:[#allocation2 + $0x24] sm:$0x33] %v1422_v50  ;;  %558 = vst [vmem:[#allocation2 + $0x2c] sm:$0x3] %v1423_v51  ;;  %v605_v57 = vsel %vm604_vm13, %v1581_v52, %v603_v49  ;;  %v606_v58 = vsel %vm604_vm13, %v1580_v53, %v1581_v52  ;;  %v607_v59 = vsel %vm604_vm13, %v603_v49, %v1580_v53  ;;  %1454 = vmatprep.subr.bf16.mxu1 %v1745_v6 }
  0xca   : > { %v617_v60 = vsel %vm604_vm13, %v606_v58, 0.0  ;;  %v618_v61 = vsel %vm609_vm14, %v605_v57, 0.0  ;;  %v619_v62 = vsel %vm610_vm15, %v607_v59, 0.0 }
  0xcb   : > { %v1426_v63 = vpack.c.bf16 %v618_v61, %v617_v60  ;;  %v1427_v0 = vpack.c.bf16 %v619_v62, %v619_v62  ;;  %v640_v3 = vld [vmem:[#allocation2 + $0x18] sm:$0xff] }
  0xcd   : > { %633 = vst [vmem:[#allocation2 + $0x30] sm:$0x33] %v1426_v63  ;;  %634 = vst [vmem:[#allocation2 + $0x38] sm:$0x3] %v1427_v0 }
  0xd0   : > { %v642_v4 = vld [vmem:[#allocation2 + $0x24] sm:$0xff]  ;;  %v1610_v10 = vld [vmem:[#allocation2 + $0x20] ss:$12 sps:$4 sm:$0xff]  }
  0xd1   : > { %v1608_v8 = vld [vmem:[#allocation2 + $0x1c] ss:$12 sps:$4 sm:$0xff]   ;;  %v1369_v11 = vcombine.low %v640_v3, %v642_v4  ;;  %1455 = vmatpush3.bf16.msra.mxu1 %v1610_v10 }
  0xd2   : > { %702 = vmatprep.subr.bf16.mxu0 %v1608_v8  ;;  %1456 = vmatprep.subr.bf16.mxu1 %v1745_v6 }
  0xd3   : > { %703 = vmatpush1.bf16.msra.mxu0 %v1369_v11  ;;  %v877_v11 = vld [vmem:[%s2213_s2] sm:$0xf] }
  0xd4   : > { %v644_v12 = vld [vmem:[#allocation2 + $0x30] sm:$0x33]  ;;  %v1613_v17 = vld [vmem:[#allocation2 + $0x38] ss:$0 sps:$4 sm:$0x33]  }
  0xd5   : > { %v1373_v13 = vcombine.high %v644_v12, %v644_v12  ;;  %v1372_v16 = vcombine.low %v644_v12, %v644_v12  ;;  %v698_v19 = vsel %vm690_vm4, %v1613_v17, 0 }
  0xd6   : > { %1457 = vmatpush3.bf16.msra.mxu1 %v698_v19  ;;  %v1050_v19 = vld [vmem:[%s2215_s4] sm:$0xf] }
  0xd7   : > { %1375 = vmatprep.subr.msk.bf16.mxu0 %vm690_vm4, %v1373_v13  ;;  %v692_v18 = vsel %vm690_vm4, %v1372_v16, 0  ;;  %1462 = vmatprep.subr.bf16.mxu1 %v1745_v6  ;;  %v469_v13 = vpack.c.bf16 %v1900_v2, %v1900_v2  ;;  %v468_v16 = vpack.c.bf16 %v1895_v1, %v1895_v1 }
  0xd8   : > { %705 = vmatpush1.bf16.msra.mxu0 %v692_v18  ;;  %v1068_v18 = vsel %vm690_vm4, %v1907_v5, 0 }
  0xd9   : > { %1459 = vmatmul.mubr.msk.bf16.vlgmr.msra.gmra.mrb[0].mxu1 %vm686_vm6, %v635_v20  ;;  %v1062_v17 = vsel %vm690_vm4, %v468_v16, 0 }
  0xda   : > { %1466 = vmatprep.mubr.msk.bf16.mxu1 %vm2227_vm0, %v1745_v6 }
  0xdb   : > { %1376 = vmatmul.mubr.msk.bf16.vlgmr.msra.gmra.mrb[0].mxu0 %vm686_vm6, %v635_v20 }
  0xdc   : > { %954 = vmatprep.mubr.bf16.mxu0 %v1749_v7 }
 0x1ac   : > { %v775_v22 = vpop.f32.mrb[0].mxu1 }
 0x1ad   : > { %v1431_v23 = vpack.c.bf16 %v775_v22, %v775_v22  ;;  %785 = vrot.lane.b32.xlu1 %v775_v22, %s1740_s15  ;;  %v1460_v25 = vpop.f32.mrb[1].mxu1 }
 0x1ae   : > { %v734_v21 = vpop.f32.mrb[0].mxu0  ;;  %v778_v27 = vpop.f32.mrb[2].mxu1 }
 0x1af   : > { %v736_v24 = vpop.f32.mrb[1].mxu0  ;;  %822 = vst [vmem:[#allocation2 + $0x14] sm:$0xf] %v1431_v23  ;;  %v1461_v30 = vpop.f32.mrb[3].mxu1 }
 0x1b0   : > { %v738_v26 = vpop.f32.mrb[2].mxu0  ;;  %v1582_v28 = vpack.i.bf16 %v736_v24, %v734_v21 }
 0x1b1   : > { %v739_v29 = vpop.f32.mrb[3].mxu0  ;;  %827 = vrot.lane.b32.xlu1 %v775_v22, %s1744_s19 }
 0x1b2   : > { %1583 = vrot.lane.b32.xlu0 %v1582_v28, %s1740_s15  ;;  %s1677_s15 = scalar_lea.vmem %s1676_s29, 768 }
 0x1b5   : > { %854 = vrot.lane.b32.xlu1 %v775_v22, %s1747_s13 }
 0x1b6   : > { %1588 = vrot.lane.b32.xlu0 %v1582_v28, %s1744_s19 }
 0x1ba   : > { %1593 = vrot.lane.b32.xlu0 %v1582_v28, %s1747_s13  ;;  %s1440_s13 = smul.u32 384, %s1809_s25  ;;  %s1259_s25 = scalar_lea.sflag [#allocation5], %s1887_s20 }
 0x1bc   : > { %s2167_s17 = scalar_lea.hbm %s2217_s6, %s1440_s13 }
 0x21f   : > { %v786_v31 = vpop.permute.xlu1 %785 }
 0x223   : > { %v828_v39 = vpop.permute.xlu1 %827 }
 0x224   : > { %v1584_v32 = vpop.permute.xlu0 %1583 }
 0x225   : > { %v1586_v33 = vunpack.i.h.bf16 %v1584_v32  ;;  %v1585_v34 = vunpack.i.l.bf16 %v1584_v32 }
 0x227   : > { %v787_v35 = vsel %vm435_vm3, %v1586_v33, %v786_v31  ;;  %v788_v36 = vsel %vm435_vm3, %v1585_v34, %v1586_v33  ;;  %v789_v37 = vsel %vm435_vm3, %v786_v31, %v1585_v34  ;;  %vm1751_vm3 = vmmov 1   ;;  %v855_v56 = vpop.permute.xlu1 %854 }
 0x228   : > { %v792_v38 = vsel %vm441_vm10, %v787_v35, 0.0  ;;  %v1589_v40 = vpop.permute.xlu0 %1588  ;;  %vm1619_vm10 = vmpackc.low %vm1751_vm3, %vm440_vm9  ;;  %v1620_v55 = vpack.c.bf16 %v736_v24, %v788_v36  ;;  %v1623_v57 = vpack.c.bf16 %v734_v21, %v789_v37 }
 0x229   : > { %v1429_v41 = vpack.c.bf16 %v792_v38, %v792_v38  ;;  %v1591_v42 = vunpack.i.h.bf16 %v1589_v40  ;;  %v1590_v43 = vunpack.i.l.bf16 %v1589_v40  ;;  %vm1622_vm13 = vmpackc.low %vm1751_vm3, %vm439_vm5 }
 0x22a   : > { %1621 = vmatprep.subr.msk.bf16.mxu0 %vm1619_vm10, %v1620_v55  ;;  %vm1627_vm5 = vmpackc.low %vm533_vm11, %vm494_vm8 }
 0x22b   : > { %807 = vst [vmem:[#allocation2 + $0x8] sm:$0xf] %v1429_v41  ;;  %v829_v44 = vsel %vm489_vm1, %v1591_v42, %v828_v39  ;;  %v830_v45 = vsel %vm489_vm1, %v1590_v43, %v1591_v42  ;;  %v831_v46 = vsel %vm489_vm1, %v828_v39, %v1590_v43  ;;  %1624 = vmatpush1.bf16.msk.msra.mxu0 %vm1622_vm13, %v1623_v57  ;;  %vm1630_vm9 = vmpackc.low %vm528_vm7, %vm489_vm1 }
 0x22c   : > { %v833_v47 = vsel %vm494_vm8, %v829_v44, 0.0  ;;  %v832_v48 = vsel %vm489_vm1, %v830_v45, 0.0  ;;  %v834_v49 = vsel %vm495_vm2, %v831_v46, 0.0  ;;  %v1594_v50 = vpop.permute.xlu0 %1593  ;;  %vm1638_vm14 = vmpackc.low %vm489_vm1, %vm1751_vm3 }
 0x22d   : > { %v1432_v51 = vpack.c.bf16 %v833_v47, %v832_v48  ;;  %v1433_v52 = vpack.c.bf16 %v834_v49, %v834_v49  ;;  %v1596_v53 = vunpack.i.h.bf16 %v1594_v50  ;;  %v1595_v54 = vunpack.i.l.bf16 %v1594_v50 }
 0x22f   : > { %848 = vst [vmem:[#allocation2 + $0x18] sm:$0xff] %v1432_v51  ;;  %849 = vst [vmem:[#allocation2 + $0x20] sm:$0xf] %v1433_v52  ;;  %v856_v58 = vsel %vm528_vm7, %v1596_v53, %v855_v56  ;;  %v857_v59 = vsel %vm528_vm7, %v1595_v54, %v1596_v53  ;;  %v858_v60 = vsel %vm528_vm7, %v855_v56, %v1595_v54 }
 0x230   : > { %v860_v61 = vsel %vm533_vm11, %v856_v58, 0.0  ;;  %v859_v62 = vsel %vm528_vm7, %v857_v59, 0.0  ;;  %v861_v63 = vsel %vm534_vm12, %v858_v60, 0.0  ;;  %v1628_v8 = vpack.c.bf16 %v856_v58, %v829_v44  ;;  %vm1635_vm11 = vmpackc.low %vm494_vm8, %vm1751_vm3 }
 0x231   : > { %v1434_v0 = vpack.c.bf16 %v860_v61, %v859_v62  ;;  %v1435_v3 = vpack.c.bf16 %v861_v63, %v861_v63  ;;  %v1631_v10 = vpack.c.bf16 %v857_v59, %v830_v45  ;;  %vm918_vm12 = vcmask 261120  }
 0x232   : > { %v1614_v4 = vld [vmem:[#allocation2 + $0x8] ss:$12 sps:$4 sm:$0xff]   ;;  %1629 = vmatprep.subr.msk.bf16.mxu0 %vm1627_vm5, %v1628_v8  ;;  %vm1057_vm7 = vcmask 31744  }
 0x233   : > { %875 = vst [vmem:[#allocation2 + $0x24] sm:$0xff] %v1434_v0  ;;  %876 = vst [vmem:[#allocation2 + $0x2c] sm:$0xf] %v1435_v3  ;;  %1463 = vmatpush3.bf16.msra.mxu1 %v1614_v4  ;;  %1632 = vmatpush1.bf16.msk.msra.mxu0 %vm1630_vm9, %v1631_v10 }
 0x234   : > { %1464 = vmatprep.subr.bf16.mxu1 %v1745_v6  ;;  %1398 = vmatprep.subr.msk.bf16.mxu0 %vm690_vm4, %v469_v13 }
 0x236   : > { %1392 = vmatmul.mubr.msk.bf16.vlgmr.msra.gmra.mrb[4].mxu0 %vm918_vm12, %v877_v11 }
 0x237   : > { %1102 = vmatprep.mubr.bf16.mxu0 %v1749_v7  ;;  %1071 = vmatpush1.bf16.msra.mxu0 %v1062_v17 }
 0x23a   : > { %v1615_v12 = vld [vmem:[#allocation2 + $0x20] ss:$12 sps:$4 sm:$0xff]  }
 0x23b   : > { %1465 = vmatpush3.bf16.msra.mxu1 %v1615_v12 }
 0x23c   : > { %1470 = vmatprep.subr.bf16.mxu1 %v1745_v6 }
 0x23e   : > { %1467 = vmatmul.mubr.msk.bf16.vlgmr.msra.gmra.mrb[4].mxu1 %vm918_vm12, %v877_v11  ;;  %1399 = vmatmul.mubr.msk.bf16.vlgmr.msra.gmra.mrb[8].mxu0 %vm1057_vm7, %v1050_v19 }
 0x23f   : > { %1472 = vmatprep.mubr.msk.bf16.mxu1 %vm2227_vm0, %v1745_v6  ;;  %1471 = vmatpush3.bf16.msra.mxu1 %v1068_v18 }
 0x240   : > { %1476 = vmatprep.subr.bf16.mxu1 %v1745_v6  ;;  %1206 = vmatprep.mubr.bf16.mxu0 %v1749_v7  ;;  %v1051_v7 = vld [vmem:[%s2216_s5] sm:$0xff] }
 0x246   : > { %1473 = vmatmul.mubr.msk.bf16.vlgmr.msra.gmra.mrb[8].mxu1 %vm1057_vm7, %v1050_v19 }
 0x247   : > { %1478 = vmatprep.mubr.msk.bf16.mxu1 %vm2227_vm0, %v1745_v6 }
 0x309   : > { %v956_v20 = vpop.f32.mrb[4].mxu0 }
 0x30a   : > { %v958_v2 = vpop.f32.mrb[5].mxu0 }
 0x30b   : > { %v1597_v1 = vpack.i.bf16 %v958_v2, %v956_v20  ;;  %v1436_v21 = vpack.c.bf16 %v958_v2, %v956_v20  ;;  %v960_v22 = vpop.f32.mrb[6].mxu0 }
 0x30c   : > { %v961_v23 = vpop.f32.mrb[7].mxu0 }
 0x30d   : > { %1016 = vst [vmem:[#allocation2] sm:$0xff] %v1436_v21  ;;  %1598 = vrot.lane.b32.xlu0 %v1597_v1, %s1744_s19 }
 0x311   : > { %v997_v5 = vpop.f32.mrb[4].mxu1  ;;  %1054 = vperm.xlu0 %1602, %v1051_v7   ;;  %v1104_v14 = vpop.f32.mrb[8].mxu0 }
 0x312   : > { %v1437_v24 = vpack.c.bf16 %v997_v5, %v997_v5  ;;  %v1468_v25 = vpop.f32.mrb[5].mxu1  ;;  %1022 = vrot.lane.b32.xlu1 %v997_v5, %s1744_s19  ;;  %v1106_v42 = vpop.f32.mrb[9].mxu0  ;;  %s1484_s19 = smul.u32 24, %s1887_s20 }
 0x313   : > { %v1000_v26 = vpop.f32.mrb[6].mxu1  ;;  %v1108_v44 = vpop.f32.mrb[10].mxu0 }
 0x314   : > { %1017 = vst [vmem:[#allocation2 + $0x8] sm:$0xf] %v1437_v24  ;;  %v1469_v27 = vpop.f32.mrb[7].mxu1  ;;  %v1109_v46 = vpop.f32.mrb[11].mxu0  ;;  %s267_s11 = scalar_lea.vmem [#allocation6], %s1484_s19 }
 0x315   : > { %s1273_s10 = sshll.u32 %s267_s11, 4  ;;  %s2169_s10 = int_to_ptr.vmem [resolvable:$true] %s1273_s10 }
 0x316   : > { %s1671_s26 = scalar_lea.vmem %s2169_s10, 384  ;;  %p1678_p5 = scmp.lt.s32.totalorder %s2169_s10, %s1676_s29 }
 0x317   : > { %p1672_p6 = scmp.ne.s32.totalorder %s2169_s10, %s1671_s26  ;;  %p1679_p10 = scmp.lt.s32.totalorder %s1677_s15, %s1671_s26 }
 0x319   : > { %v1145_v43 = vpop.f32.mrb[8].mxu1  ;;  %p1673_p12 = pnand %p1672_p6, %p2228_p11  ;;  %p1680_p2 = por %p1679_p10, %p1678_p5 }
 0x31a   : > { %v1474_v45 = vpop.f32.mrb[9].mxu1 }
 0x31b   : > { %v1148_v9 = vpop.f32.mrb[10].mxu1  ;;  %p1674_p13 = pneg %p1673_p12 }
 0x31c   : > { %v1475_v47 = vpop.f32.mrb[11].mxu1 }
 0x31d   : > { %p1681_p4 = pnand %p1680_p2, %p1674_p13 }
 0x37f   : > { %v1599_v28 = vpop.permute.xlu0 %1598 }
 0x380   : > { %v1601_v29 = vunpack.i.h.bf16 %v1599_v28  ;;  %v1600_v30 = vunpack.i.l.bf16 %v1599_v28 }
 0x382   : > { %v1025_v31 = vsel %vm489_vm1, %v1600_v30, %v1601_v29 }
 0x383   : > { %v1027_v34 = vsel %vm489_vm1, %v1025_v31, 0.0  ;;  %v1639_v40 = vpack.c.bf16 %v1025_v31, %v956_v20 }
 0x384   : > { %v1023_v6 = vpop.permute.xlu1 %1022 }
 0x385   : > { %v1024_v32 = vsel %vm489_vm1, %v1601_v29, %v1023_v6  ;;  %v1026_v33 = vsel %vm489_vm1, %v1023_v6, %v1600_v30 }
 0x386   : > { %v1028_v35 = vsel %vm494_vm8, %v1024_v32, 0.0  ;;  %v1029_v36 = vsel %vm495_vm2, %v1026_v33, 0.0  ;;  %v1636_v39 = vpack.c.bf16 %v1024_v32, %v958_v2  ;;  %vm1170_vm2 = vcmask 130048  }
 0x387   : > { %v1438_v37 = vpack.c.bf16 %v1028_v35, %v1027_v34  ;;  %v1439_v38 = vpack.c.bf16 %v1029_v36, %v1029_v36 }
 0x388   : > { %1637 = vmatprep.subr.msk.bf16.mxu0 %vm1635_vm11, %v1636_v39 }
 0x389   : > { %1043 = vst [vmem:[#allocation2 + $0xc] sm:$0xff] %v1438_v37  ;;  %1044 = vst [vmem:[#allocation2 + $0x14] sm:$0xf] %v1439_v38  ;;  %1640 = vmatpush1.bf16.msk.msra.mxu0 %vm1638_vm14, %v1639_v40 }
 0x38c   : > { %1404 = vmatmul.mubr.msk.bf16.vlgmr.msra.gmra.mrb[12].mxu0 %vm1170_vm2, %v1045_v15 }
 0x390   : > { %v1616_v41 = vld [vmem:[#allocation2 + $0x8] ss:$12 sps:$4 sm:$0xff]   ;;  %v1055_v48 = vpop.permute.xlu0 %1054 }
 0x391   : > { %1477 = vmatpush3.bf16.msra.mxu1 %v1616_v41  ;;  %v1105_v49 = vadd.f32 %v1104_v14, %v1055_v48  ;;  %v1107_v50 = vadd.f32 %v1106_v42, %v1055_v48  ;;  %v1146_v54 = vadd.f32 %v1145_v43, %v1055_v48 }
 0x393   : > { %v1151_v51 = vmax.f32 %v1105_v49, 0.0  ;;  %v1152_v52 = vmax.f32 %v1107_v50, 0.0  ;;  %v1153_v60 = vmax.f32 %v1146_v54, 0.0 }
 0x394   : > { %1479 = vmatmul.mubr.msk.bf16.vlgmr.msra.gmra.mrb[12].mxu1 %vm1170_vm2, %v1045_v15 }
 0x45f   : > { %v1208_v53 = vpop.f32.mrb[12].mxu0 }
 0x460   : > { %v1209_v55 = vadd.f32 %v1208_v53, %v1151_v51  ;;  %v1210_v56 = vpop.f32.mrb[13].mxu0 }
 0x461   : > { %v1211_v57 = vadd.f32 %v1210_v56, %v1152_v52  ;;  %v1212_v58 = vpop.f32.mrb[14].mxu0 }
 0x462   : > { %1255 = vst [vmem:[%s267_s11] sm:$0xff] %v1209_v55  ;;  %v1213_v59 = vpop.f32.mrb[15].mxu0 }
 0x463   : > { %1256 = vst [vmem:[%s267_s11 + $0x8] sm:$0xff] %v1211_v57 }
 0x467   : > { %v1249_v61 = vpop.f32.mrb[12].mxu1 }
 0x468   : > { %v1250_v62 = vadd.f32 %v1249_v61, %v1153_v60  ;;  %v1480_v63 = vpop.f32.mrb[13].mxu1 }
 0x469   : > { %v1252_v0 = vpop.f32.mrb[14].mxu1 }
 0x46a   : > { %1257 = vst [vmem:[%s267_s11 + $0x10] sm:$0xff] %v1250_v62  ;;  %v1481_v3 = vpop.f32.mrb[15].mxu1 }
 0x46b   : > { %1684 = shalt.err (!%p1681_p4)
}
 0x46c   : > { %s1685_s20 = scalar_lea.hbm %s2167_s17, 384  ;;  %s1689_s7 = scalar_lea.hbm %s2217_s6, 768 }
 0x46d   : > { %p1686_p7 = scmp.ne.s32.totalorder %s2167_s17, %s1685_s20  ;;  %p1690_p0 = scmp.lt.u32.totalorder %s2167_s17, %s2217_s6 }
 0x46e   : > { %p1691_p1 = scmp.lt.u32.totalorder %s1689_s7, %s1685_s20  ;;  %p1693_p6 = scmp.lt.u32.totalorder %s1685_s20, %s2167_s17 }
 0x46f   : > { %p1687_p8 = pnand %p1686_p7, %p2228_p11 }
 0x470   : > { %p1692_p3 = por %p1691_p1, %p1690_p0 }
 0x471   : > { %p1688_p9 = pneg %p1687_p8 }
 0x472   : > { %p1694_p12 = por %p1693_p6, %p1692_p3 }
 0x474   : > { %p1695_p13 = pnand %p1694_p12, %p1688_p9 }
 0x476   : > { %1698 = shalt.err (!%p1695_p13)
}
 0x477   : > { %1487 = dma.vmem_to_hbm [thread:$0]  (%p2228_p11), %s2169_s10, 384, %s2167_s17, %s1259_s25  }
 0x478 PF: > { %s1285_s13 = sand.u32 1, %s1725_s21   ;;  %p2229_p5 = scmp.ne.s32.totalorder %s2223_s9, 0 }
 0x479   : > { %p2230_p10 = scmp.ge.s32.totalorder %s1737_s24, 2  ;;  %s1286_s12 = scalar_lea.sflag [#allocation5], %s1285_s13 }
 0x47b   : > { %p1494_p2 = pnand %p2230_p10, %p2229_p5 }
 0x47d   : > { %1720 = dma.done.wait (!%p1494_p2), %s1286_s12, 384  }
 0x47e   : > { %1722 = vsyncadd (!%p1494_p2), %s1286_s12, 4294966912  ;;  %p19_p4 = scmp.ge.s32.totalorder %s1813_s27, 4   ;;  %s2231_s21 = smov %s1729_s22 }
 0x47f   : > { %s2232_s22 = smov %s1733_s23  ;;  %s2233_s23 = smov %s1825_s30 }
 0x480   : > { %s2234_s24 = smov %s1813_s27  ;;  %21 = sbr.rel (!%p19_p4) target bundleno = 5 (0x5), region = 89 }
 0x487   :  { %1291 = vsyncpa [#allocation4], 1 }
 0x488   :  { %1293 = vsyncpa [#allocation4 + $0x1], 1 }
 0x489   :  { %1294 = vsyncpa [#allocation5], 1 }
 0x48a   :  { %1296 = vsyncpa [#allocation5 + $0x1], 1 }

</bundles_post_ra>
